<compile_context>
chip_gen: v7x
topology: tpu7x:2x2x1
jax: 0.10.0
libtpu: 0.0.40
codegen_flags: <defaults>
</compile_context>

<pallas_src>
import functools

import numpy as np
import jax
import jax.numpy as jnp
from jax.experimental import pallas as pl
from jax.experimental.pallas import tpu as pltpu


# ---------------------------------------------------------------------------
# Pallas kernels
# ---------------------------------------------------------------------------
def _treelstm_kernel(x_ref, hx_ref, wx_ref, wh_ref, ucat_ref, bf_ref, biou_ref,
                     lvl_ref, kids_ref, a_ref, h0_ref, c0_ref,
                     h_ref, c_ref, iou_scr, *, h_size):
    """One topological level per grid step (ChildSum Tree-LSTM propagation).

    Semantics match DGL prop_nodes_topo with the module's message/reduce/apply:
      - nodes without predecessors use iou = W_iou(X) (init) and their init c
      - nodes with predecessors use iou = U_iou(sum_h_children) and
        c = sum(sigmoid(U_f(h_child)) * c_child)
      - apply: i,o,u = chunk(iou + b_iou); c = i*u + c_prev; h = o*tanh(c)
    """
    l = pl.program_id(0)

    @pl.when(l == 0)
    def _init():
        h_ref[...] = h0_ref[...]
        c_ref[...] = c0_ref[...]
        # iou init for every node: X @ W_x + hx @ W_h  (bias-free)
        iou_scr[...] = (
            jnp.dot(x_ref[...].astype(jnp.bfloat16), wx_ref[...],
                    preferred_element_type=jnp.float32)
            + jnp.dot(hx_ref[...].astype(jnp.bfloat16), wh_ref[...],
                      preferred_element_type=jnp.float32))

    H = h_ref[...]                                   # (N, H) f32
    C = c_ref[...]                                   # (N, H) f32
    A = a_ref[0]                                     # (N, N) bf16, this level

    # Fused per-node transform: [H @ U_iou | H @ U_f]  -> (N, 4H) lane-dense.
    G = jnp.dot(H.astype(jnp.bfloat16), ucat_ref[...],
                preferred_element_type=jnp.float32)  # (N, 4H)
    f = jax.nn.sigmoid(G[:, 3 * h_size:] + bf_ref[...])        # (N, H) f32

    # Single A-side matmul: A @ [H@U_iou | f*C] = [iou_red | c_red], (N, 4H).
    rhs = jnp.concatenate([G[:, :3 * h_size], f * C],
                          axis=1).astype(jnp.bfloat16)
    R = jnp.dot(A, rhs, preferred_element_type=jnp.float32)    # (N, 4H)

    front = lvl_ref[...] == l                        # (N, 1) nodes in frontier l
    kids = kids_ref[...] > 0                         # (N, 1) nodes with preds

    # apply_node_func (reduce output overwrites 'iou'/'c' for nodes w/ children)
    iou = jnp.where(kids, R[:, :3 * h_size], iou_scr[...]) + biou_ref[...]
    c_prev = jnp.where(kids, R[:, 3 * h_size:], C)

    i = jax.nn.sigmoid(iou[:, :h_size])
    o = jax.nn.sigmoid(iou[:, h_size:2 * h_size])
    u = jnp.tanh(iou[:, 2 * h_size:])
    c_new = i * u + c_prev
    h_new = o * jnp.tanh(c_new)

    # only nodes in this frontier are updated
    h_ref[...] = jnp.where(front, h_new, H)
    c_ref[...] = jnp.where(front, c_new, C)


def _readout_kernel(rootsel_ref, leafsel_ref, hbu_ref, htd_ref, out_ref):
    # root selection (bottom-up h) and per-tree leaf mean (top-down h);
    # output slab is padded to a multiple of 128 lanes (sliced in the wrapper).
    root_h = jnp.dot(rootsel_ref[...], hbu_ref[...],
                     preferred_element_type=jnp.float32)        # (T, H)
    leaf_h = jnp.dot(leafsel_ref[...], htd_ref[...],
                     preferred_element_type=jnp.float32)        # (T, H)
    rows, hw = root_h.shape
    pad = out_ref.shape[1] - 2 * hw
    parts = [root_h, leaf_h]
    if pad:
        parts.append(jnp.zeros((rows, pad), jnp.float32))
    out_ref[...] = jnp.concatenate(parts, axis=1)


# ---------------------------------------------------------------------------
# Wrappers (glue)
# ---------------------------------------------------------------------------
_VMEM = pl.BlockSpec(memory_space=pltpu.MemorySpace.VMEM)
_VMEM_LIMIT = 48 * 1024 * 1024   # explicit scoped-VMEM budget (< 64 MiB v7x)


def treelstm_propagate(X, hx, p, node_level, haskids, A, h0, c0):
    N, Hs = h0.shape
    xs = X.shape[1]
    L = A.shape[0]
    kernel = functools.partial(_treelstm_kernel, h_size=Hs)

    def const(shape):
        return pl.BlockSpec(shape, lambda l: (0,) * len(shape))

    grid_spec = pltpu.PrefetchScalarGridSpec(
        num_scalar_prefetch=0,
        grid=(L,),
        in_specs=[
            const((N, xs)),                                # X
            const((N, Hs)),                                # hx (extra feature)
            const((xs, 3 * Hs)),                           # W_x  (bf16)
            const((Hs, 3 * Hs)),                           # W_h  (bf16)
            const((Hs, 4 * Hs)),                           # [U_iou | U_f] (bf16)
            const((N, Hs)),                                # b_f  (pre-broadcast)
            const((N, 3 * Hs)),                            # b_iou (pre-broadcast)
            const((N, 1)),                                 # node topo level (i32)
            const((N, 1)),                                 # has-predecessors (i32)
            pl.BlockSpec((1, N, N), lambda l: (l, 0, 0)),  # A streamed per level
            const((N, Hs)),                                # h0
            const((N, Hs)),                                # c0
        ],
        out_specs=(const((N, Hs)), const((N, Hs))),        # resident h, c
        scratch_shapes=[pltpu.VMEM((N, 3 * Hs), jnp.float32)],
    )
    h_out, c_out = pl.pallas_call(
        kernel,
        out_shape=(jax.ShapeDtypeStruct((N, Hs), jnp.float32),
                   jax.ShapeDtypeStruct((N, Hs), jnp.float32)),
        grid_spec=grid_spec,
        compiler_params=pltpu.CompilerParams(
            dimension_semantics=("arbitrary",),
            vmem_limit_bytes=_VMEM_LIMIT),
    )(X, hx, p["Wx"], p["Wh"], p["Ucat"], p["bf_b"], p["biou_b"],
      node_level, haskids, A, h0, c0)
    return h_out, c_out


def bidi_treelstm_forward(params_bu, params_td, graph, X, h0, c0):
    N, x_size = X.shape
    Hs = h0.shape[1]

    def prep(params, wx, wh):
        return dict(
            Wx=wx.astype(jnp.bfloat16),
            Wh=wh.astype(jnp.bfloat16),
            Ucat=jnp.concatenate([params["U_iou"], params["U_f"]],
                                 axis=1).astype(jnp.bfloat16),
            bf_b=jnp.broadcast_to(params["b_f"], (N, Hs)).astype(jnp.float32),
            biou_b=jnp.broadcast_to(params["b_iou"],
                                    (N, 3 * Hs)).astype(jnp.float32),
        )

    # bottom-up: iou_init = X @ W_iou  (extra-feature path zeroed out)
    p_bu = prep(params_bu, params_bu["W_iou"],
                jnp.zeros((Hs, 3 * Hs), jnp.float32))
    h_bu, _ = treelstm_propagate(X, h0, p_bu,
                                 graph["lvl_bu"], graph["kids_bu"],
                                 graph["A_bu"], h0, c0)

    # top-down over reversed trees, input = cat([X, h_bu]) done implicitly by
    # splitting W_iou — avoids materializing the concat in HBM.
    p_td = prep(params_td, params_td["W_iou"][:x_size],
                params_td["W_iou"][x_size:])
    h_td, _ = treelstm_propagate(X, h_bu, p_td,
                                 graph["lvl_td"], graph["kids_td"],
                                 graph["A_td"], h0, c0)

    # readout: [root h (bottom-up) , mean over leaves of h (top-down)]
    T = graph["rootsel"].shape[0]
    out_w = ((2 * Hs + 127) // 128) * 128
    out_pad = pl.pallas_call(
        _readout_kernel,
        out_shape=jax.ShapeDtypeStruct((T, out_w), jnp.float32),
        in_specs=[_VMEM] * 4,
        out_specs=_VMEM,
        compiler_params=pltpu.CompilerParams(vmem_limit_bytes=_VMEM_LIMIT),
    )(graph["rootsel"], graph["leafsel"], h_bu, h_td)
    out = out_pad[:, :2 * Hs]
    return out, h_bu, h_td


# ---------------------------------------------------------------------------
# Host-side graph construction (glue)
# ---------------------------------------------------------------------------
def _topo_frontiers(N, edges):
    indeg = [0] * N
    out_adj = [[] for _ in range(N)]
    for s, d in edges:
        indeg[d] += 1
        out_adj[s].append(d)
    frontiers = []
    cur = [v for v in range(N) if indeg[v] == 0]
    while cur:
        frontiers.append(cur)
        nxt = []
        for v in cur:
            for w in out_adj[v]:
                indeg[w] -= 1
                if indeg[w] == 0:
                    nxt.append(w)
        cur = nxt
    return frontiers


def _level_arrays(N, edges):
    frontiers = _topo_frontiers(N, edges)
    preds = [[] for _ in range(N)]
    for s, d in edges:
        preds[d].append(s)
    L = len(frontiers)
    A = np.zeros((L, N, N), np.float32)
    node_level = np.zeros((N, 1), np.int32)
    haskids = np.zeros((N, 1), np.int32)
    for l, fr in enumerate(frontiers):
        for v in fr:
            node_level[v, 0] = l
            if preds[v]:
                haskids[v, 0] = 1
                for s in preds[v]:
                    A[l, v, s] = 1.0
    return A, node_level, haskids, frontiers, preds


def build_batch():
    # two trees, root is the first (lowest-id) node of each tree, edges child->parent
    trees = [
        (8, {1: 0, 2: 0, 3: 1, 4: 1, 5: 2, 6: 2, 7: 2}),
        (8, {1: 0, 2: 1, 3: 1, 4: 2, 5: 2, 6: 3, 7: 3}),
    ]
    N = sum(n for n, _ in trees)
    edges_bu, root_ids = [], []
    isleaf = np.zeros(N, np.int32)
    off = 0
    for n, parent in trees:
        root_ids.append(off)
        has_child = set(parent.values())
        for child, par in parent.items():
            edges_bu.append((off + child, off + par))
        for v in range(n):
            if v not in has_child:
                isleaf[off + v] = 1
        off += n
    edges_td = [(p, c) for (c, p) in edges_bu]

    A_bu, lvl_bu, kids_bu, fr_bu, preds_bu = _level_arrays(N, edges_bu)
    A_td, lvl_td, kids_td, fr_td, preds_td = _level_arrays(N, edges_td)

    T = len(trees)
    rootsel = np.zeros((T, N), np.float32)
    leafsel = np.zeros((T, N), np.float32)
    lims = root_ids + [N]
    for t in range(T):
        rootsel[t, root_ids[t]] = 1.0
        leaves = [v for v in range(lims[t], lims[t + 1]) if isleaf[v]]
        for v in leaves:
            leafsel[t, v] = 1.0 / len(leaves)

    graph = dict(
        # A is 0/1 so bf16 is exact; halves VMEM/DMA of the dominant tensor
        A_bu=jnp.asarray(A_bu, jnp.bfloat16),
        lvl_bu=jnp.asarray(lvl_bu), kids_bu=jnp.asarray(kids_bu),
        A_td=jnp.asarray(A_td, jnp.bfloat16),
        lvl_td=jnp.asarray(lvl_td), kids_td=jnp.asarray(kids_td),
        rootsel=jnp.asarray(rootsel), leafsel=jnp.asarray(leafsel),
    )
    meta = dict(N=N, root_ids=root_ids, isleaf=isleaf,
                frontiers_bu=fr_bu, preds_bu=preds_bu,
                frontiers_td=fr_td, preds_td=preds_td)
    return graph, meta


# ---------------------------------------------------------------------------
# Parameter init (deterministic, PyTorch nn.Linear-style ranges)
# ---------------------------------------------------------------------------
def init_cell_params(key, x_size, h_size):
    k1, k2, k3, k4 = jax.random.split(key, 4)

    def lin(k, fan_in, fan_out):
        bound = 1.0 / np.sqrt(fan_in)
        return jax.random.uniform(k, (fan_in, fan_out), jnp.float32, -bound, bound)

    bound_h = 1.0 / np.sqrt(h_size)
    return dict(
        W_iou=lin(k1, x_size, 3 * h_size),                       # bias=False
        U_iou=lin(k2, h_size, 3 * h_size),                       # bias=False
        U_f=lin(k3, h_size, h_size),
        b_f=jax.random.uniform(k4, (1, h_size), jnp.float32, -bound_h, bound_h),
        b_iou=jnp.zeros((1, 3 * h_size), jnp.float32),           # module inits to zeros
    )


# ---------------------------------------------------------------------------
# Pure numpy reference (mirrors the DGL/PyTorch forward exactly)
# ---------------------------------------------------------------------------
def _sig(x):
    return 1.0 / (1.0 + np.exp(-x))


def ref_propagate(X, p, frontiers, preds, h0, c0, h_size):
    X = np.asarray(X)
    Wiou, Uiou, Uf = np.asarray(p["W_iou"]), np.asarray(p["U_iou"]), np.asarray(p["U_f"])
    bf, biou = np.asarray(p["b_f"])[0], np.asarray(p["b_iou"])[0]
    iou_init = X @ Wiou
    h = np.array(h0, np.float64)
    c = np.array(c0, np.float64)
    for fr in frontiers:
        h_cur, c_cur = h.copy(), c.copy()
        for v in fr:
            pr = preds[v]
            if pr:
                hc, cc = h_cur[pr], c_cur[pr]
                h_tild = hc.sum(0)
                f = _sig(hc @ Uf + bf)
                c_prev = (f * cc).sum(0)
                iou = h_tild @ Uiou
            else:
                iou = iou_init[v]
                c_prev = c_cur[v]
            iou = iou + biou
            i, o, u = iou[:h_size], iou[h_size:2 * h_size], iou[2 * h_size:]
            i, o, u = _sig(i), _sig(o), np.tanh(u)
            c_new = i * u + c_prev
            h[v] = o * np.tanh(c_new)
            c[v] = c_new
    return h


def ref_forward(params_bu, params_td, meta, X, h0, c0, h_size):
    h_bu = ref_propagate(X, params_bu, meta["frontiers_bu"], meta["preds_bu"],
                         h0, c0, h_size)
    X_td = np.concatenate([np.asarray(X), h_bu], axis=1)
    h_td = ref_propagate(X_td, params_td, meta["frontiers_td"], meta["preds_td"],
                         h0, c0, h_size)
    root_ids = meta["root_ids"]
    lims = root_ids + [meta["N"]]
    rows = []
    for t, (s, e) in enumerate(zip(lims[:-1], lims[1:])):
        tree_h = h_td[s:e]
        leaves = meta["isleaf"][s:e]
        leaf_mean = tree_h[leaves > 0].mean(0)
        rows.append(np.concatenate([h_bu[root_ids[t]], leaf_mean]))
    return np.stack(rows)


# ---------------------------------------------------------------------------
if __name__ == "__main__":
    x_size, h_size = 16, 32
    graph, meta = build_batch()
    N = meta["N"]

    key = jax.random.PRNGKey(0)
    k_pbu, k_ptd, k_x, k_h, k_c = jax.random.split(key, 5)
    params_bu = init_cell_params(k_pbu, x_size, h_size)
    params_td = init_cell_params(k_ptd, x_size + h_size, h_size)

    X = jax.random.normal(k_x, (N, x_size), jnp.float32)
    h0 = jax.random.normal(k_h, (N, h_size), jnp.float32) * 0.1
    c0 = jax.random.normal(k_c, (N, h_size), jnp.float32) * 0.1

    out, h_bu, h_td = bidi_treelstm_forward(params_bu, params_td, graph, X, h0, c0)
    out = jax.block_until_ready(out)

    ref = ref_forward(params_bu, params_td, meta, X, h0, c0, h_size)
    np.testing.assert_allclose(np.asarray(out), ref, rtol=5e-2, atol=5e-2)

    print("KERNEL_OK")
</pallas_src>

<mosaic_0001>
module attributes {stable_mosaic.version = 11 : i64} {
  func.func @_treelstm_kernel(%arg0: i32, %arg1: memref<16x16xf32, #tpu.memory_space<vmem>>, %arg2: memref<16x32xf32, #tpu.memory_space<vmem>>, %arg3: memref<16x96xbf16, #tpu.memory_space<vmem>>, %arg4: memref<32x96xbf16, #tpu.memory_space<vmem>>, %arg5: memref<32x128xbf16, #tpu.memory_space<vmem>>, %arg6: memref<16x32xf32, #tpu.memory_space<vmem>>, %arg7: memref<16x96xf32, #tpu.memory_space<vmem>>, %arg8: memref<16x1xi32, #tpu.memory_space<vmem>>, %arg9: memref<16x1xi32, #tpu.memory_space<vmem>>, %arg10: memref<1x16x16xbf16, #tpu.memory_space<vmem>>, %arg11: memref<16x32xf32, #tpu.memory_space<vmem>>, %arg12: memref<16x32xf32, #tpu.memory_space<vmem>>, %arg13: memref<16x32xf32, #tpu.memory_space<vmem>>, %arg14: memref<16x32xf32, #tpu.memory_space<vmem>>, %arg15: memref<16x96xf32, #tpu.memory_space<vmem>>) attributes {dimension_semantics = [#tpu.dimension_semantics<arbitrary>], iteration_bounds = array<i64: 4>, scalar_prefetch = 0 : i64, scratch_operands = 1 : i64, tpu.core_type = #tpu.core_type<tc>, window_params = [{pipeline_mode = #tpu.pipeline_mode<synchronous>, transform_indices = @transform_0, window_bounds = array<i64: 16, 16>}, {pipeline_mode = #tpu.pipeline_mode<synchronous>, transform_indices = @transform_1, window_bounds = array<i64: 16, 32>}, {pipeline_mode = #tpu.pipeline_mode<synchronous>, transform_indices = @transform_2, window_bounds = array<i64: 16, 96>}, {pipeline_mode = #tpu.pipeline_mode<synchronous>, transform_indices = @transform_3, window_bounds = array<i64: 32, 96>}, {pipeline_mode = #tpu.pipeline_mode<synchronous>, transform_indices = @transform_4, window_bounds = array<i64: 32, 128>}, {pipeline_mode = #tpu.pipeline_mode<synchronous>, transform_indices = @transform_5, window_bounds = array<i64: 16, 32>}, {pipeline_mode = #tpu.pipeline_mode<synchronous>, transform_indices = @transform_6, window_bounds = array<i64: 16, 96>}, {pipeline_mode = #tpu.pipeline_mode<synchronous>, transform_indices = @transform_7, window_bounds = array<i64: 16, 1>}, {pipeline_mode = #tpu.pipeline_mode<synchronous>, transform_indices = @transform_8, window_bounds = array<i64: 16, 1>}, {transform_indices = @transform_9, window_bounds = array<i64: 1, 16, 16>}, {pipeline_mode = #tpu.pipeline_mode<synchronous>, transform_indices = @transform_10, window_bounds = array<i64: 16, 32>}, {pipeline_mode = #tpu.pipeline_mode<synchronous>, transform_indices = @transform_11, window_bounds = array<i64: 16, 32>}, {pipeline_mode = #tpu.pipeline_mode<synchronous>, transform_indices = @transform_12, window_bounds = array<i64: 16, 32>}, {pipeline_mode = #tpu.pipeline_mode<synchronous>, transform_indices = @transform_13, window_bounds = array<i64: 16, 32>}]} {
    %c0_i32 = arith.constant 0 : i32
    %0 = arith.cmpi eq, %arg0, %c0_i32 : i32
    %1 = arith.extui %0 : i1 to i32
    %c0_i32_0 = arith.constant 0 : i32
    %2 = arith.cmpi ne, %1, %c0_i32_0 : i32
    scf.if %2 {
      %c0_28 = arith.constant 0 : index
      %c0_29 = arith.constant 0 : index
      %66 = vector.load %arg11[%c0_28, %c0_29] : memref<16x32xf32, #tpu.memory_space<vmem>>, vector<16x32xf32>
      %c0_30 = arith.constant 0 : index
      %c0_31 = arith.constant 0 : index
      %67 = vector.load %arg13[%c0_30, %c0_31] : memref<16x32xf32, #tpu.memory_space<vmem>>, vector<16x32xf32>
      tpu.vector_store %arg13[%c0_30, %c0_31], %66 {strides = array<i32>} : memref<16x32xf32, #tpu.memory_space<vmem>>, vector<16x32xf32>,
      %c0_32 = arith.constant 0 : index
      %c0_33 = arith.constant 0 : index
      %68 = vector.load %arg12[%c0_32, %c0_33] : memref<16x32xf32, #tpu.memory_space<vmem>>, vector<16x32xf32>
      %c0_34 = arith.constant 0 : index
      %c0_35 = arith.constant 0 : index
      %69 = vector.load %arg14[%c0_34, %c0_35] : memref<16x32xf32, #tpu.memory_space<vmem>>, vector<16x32xf32>
      tpu.vector_store %arg14[%c0_34, %c0_35], %68 {strides = array<i32>} : memref<16x32xf32, #tpu.memory_space<vmem>>, vector<16x32xf32>,
      %c0_36 = arith.constant 0 : index
      %c0_37 = arith.constant 0 : index
      %70 = vector.load %arg1[%c0_36, %c0_37] : memref<16x16xf32, #tpu.memory_space<vmem>>, vector<16x16xf32>
      %71 = arith.truncf %70 : vector<16x16xf32> to vector<16x16xbf16>
      %c0_38 = arith.constant 0 : index
      %c0_39 = arith.constant 0 : index
      %72 = vector.load %arg3[%c0_38, %c0_39] : memref<16x96xbf16, #tpu.memory_space<vmem>>, vector<16x96xbf16>
      %cst_40 = arith.constant dense<0.000000e+00> : vector<16x96xf32>
      %73 = tpu.matmul %71, %72, %cst_40 {dimension_numbers = #tpu.dot_dimension_numbers<[1], [0], [0], [1], [0, 0, 1, 1], [], []>} : vector<16x16xbf16>, vector<16x96xbf16>, vector<16x96xf32> -> vector<16x96xf32>
      %c0_41 = arith.constant 0 : index
      %c0_42 = arith.constant 0 : index
      %74 = vector.load %arg2[%c0_41, %c0_42] : memref<16x32xf32, #tpu.memory_space<vmem>>, vector<16x32xf32>
      %75 = arith.truncf %74 : vector<16x32xf32> to vector<16x32xbf16>
      %c0_43 = arith.constant 0 : index
      %c0_44 = arith.constant 0 : index
      %76 = vector.load %arg4[%c0_43, %c0_44] : memref<32x96xbf16, #tpu.memory_space<vmem>>, vector<32x96xbf16>
      %cst_45 = arith.constant dense<0.000000e+00> : vector<16x96xf32>
      %77 = tpu.matmul %75, %76, %cst_45 {dimension_numbers = #tpu.dot_dimension_numbers<[1], [0], [0], [1], [0, 0, 1, 1], [], []>} : vector<16x32xbf16>, vector<32x96xbf16>, vector<16x96xf32> -> vector<16x96xf32>
      %78 = arith.addf %73, %77 : vector<16x96xf32>
      %c0_46 = arith.constant 0 : index
      %c0_47 = arith.constant 0 : index
      %79 = vector.load %arg15[%c0_46, %c0_47] : memref<16x96xf32, #tpu.memory_space<vmem>>, vector<16x96xf32>
      tpu.vector_store %arg15[%c0_46, %c0_47], %78 {strides = array<i32>} : memref<16x96xf32, #tpu.memory_space<vmem>>, vector<16x96xf32>,
    } else {
    }
    %c0 = arith.constant 0 : index
    %c0_1 = arith.constant 0 : index
    %3 = vector.load %arg13[%c0, %c0_1] : memref<16x32xf32, #tpu.memory_space<vmem>>, vector<16x32xf32>
    %c0_2 = arith.constant 0 : index
    %c0_3 = arith.constant 0 : index
    %4 = vector.load %arg14[%c0_2, %c0_3] : memref<16x32xf32, #tpu.memory_space<vmem>>, vector<16x32xf32>
    %c0_4 = arith.constant 0 : index
    %c0_5 = arith.constant 0 : index
    %c0_6 = arith.constant 0 : index
    %5 = vector.load %arg10[%c0_4, %c0_5, %c0_6] : memref<1x16x16xbf16, #tpu.memory_space<vmem>>, vector<1x16x16xbf16>
    %6 = vector.shape_cast %5 : vector<1x16x16xbf16> to vector<16x16xbf16>
    %7 = arith.truncf %3 : vector<16x32xf32> to vector<16x32xbf16>
    %c0_7 = arith.constant 0 : index
    %c0_8 = arith.constant 0 : index
    %8 = vector.load %arg5[%c0_7, %c0_8] : memref<32x128xbf16, #tpu.memory_space<vmem>>, vector<32x128xbf16>
    %cst = arith.constant dense<0.000000e+00> : vector<16x128xf32>
    %9 = tpu.matmul %7, %8, %cst {dimension_numbers = #tpu.dot_dimension_numbers<[1], [0], [0], [1], [0, 0, 1, 1], [], []>} : vector<16x32xbf16>, vector<32x128xbf16>, vector<16x128xf32> -> vector<16x128xf32>
    %10 = vector.extract_strided_slice %9 {offsets = [0, 96], sizes = [16, 32], strides = [1, 1]} : vector<16x128xf32> to vector<16x32xf32>
    %c0_9 = arith.constant 0 : index
    %c0_10 = arith.constant 0 : index
    %11 = vector.load %arg6[%c0_9, %c0_10] : memref<16x32xf32, #tpu.memory_space<vmem>>, vector<16x32xf32>
    %12 = arith.addf %10, %11 : vector<16x32xf32>
    %13 = arith.negf %12 : vector<16x32xf32>
    %14 = math.exp %13 : vector<16x32xf32>
    %cst_11 = arith.constant 1.000000e+00 : f32
    %15 = vector.broadcast %cst_11 : f32 to vector<16x32xf32>
    %16 = arith.addf %15, %14 : vector<16x32xf32>
    %17 = arith.divf %15, %16 : vector<16x32xf32>
    %18 = vector.extract_strided_slice %9 {offsets = [0, 0], sizes = [16, 96], strides = [1, 1]} : vector<16x128xf32> to vector<16x96xf32>
    %19 = arith.mulf %17, %4 : vector<16x32xf32>
    %20 = tpu.concatenate %18, %19 in 1 : vector<16x96xf32>, vector<16x32xf32> -> vector<16x128xf32>
    %21 = arith.truncf %20 : vector<16x128xf32> to vector<16x128xbf16>
    %cst_12 = arith.constant dense<0.000000e+00> : vector<16x128xf32>
    %22 = tpu.matmul %6, %21, %cst_12 {dimension_numbers = #tpu.dot_dimension_numbers<[1], [0], [0], [1], [0, 0, 1, 1], [], []>} : vector<16x16xbf16>, vector<16x128xbf16>, vector<16x128xf32> -> vector<16x128xf32>
    %c0_13 = arith.constant 0 : index
    %c0_14 = arith.constant 0 : index
    %23 = vector.load %arg8[%c0_13, %c0_14] : memref<16x1xi32, #tpu.memory_space<vmem>>, vector<16x1xi32>
    %24 = vector.broadcast %arg0 : i32 to vector<16x1xi32>
    %25 = arith.cmpi eq, %23, %24 : vector<16x1xi32>
    %c0_15 = arith.constant 0 : index
    %c0_16 = arith.constant 0 : index
    %26 = vector.load %arg9[%c0_15, %c0_16] : memref<16x1xi32, #tpu.memory_space<vmem>>, vector<16x1xi32>
    %c0_i32_17 = arith.constant 0 : i32
    %27 = vector.broadcast %c0_i32_17 : i32 to vector<16x1xi32>
    %28 = arith.cmpi sgt, %26, %27 : vector<16x1xi32>
    %29 = vector.extract_strided_slice %22 {offsets = [0, 0], sizes = [16, 96], strides = [1, 1]} : vector<16x128xf32> to vector<16x96xf32>
    %c0_18 = arith.constant 0 : index
    %c0_19 = arith.constant 0 : index
    %30 = vector.load %arg15[%c0_18, %c0_19] : memref<16x96xf32, #tpu.memory_space<vmem>>, vector<16x96xf32>
    %31 = vector.shape_cast %28 : vector<16x1xi1> to vector<16x1xi1>
    %32 = vector.broadcast %31 : vector<16x1xi1> to vector<16x96xi1>
    %33 = arith.select %32, %29, %30 : vector<16x96xi1>, vector<16x96xf32>
    %c0_20 = arith.constant 0 : index
    %c0_21 = arith.constant 0 : index
    %34 = vector.load %arg7[%c0_20, %c0_21] : memref<16x96xf32, #tpu.memory_space<vmem>>, vector<16x96xf32>
    %35 = arith.addf %33, %34 : vector<16x96xf32>
    %36 = vector.extract_strided_slice %22 {offsets = [0, 96], sizes = [16, 32], strides = [1, 1]} : vector<16x128xf32> to vector<16x32xf32>
    %37 = vector.shape_cast %28 : vector<16x1xi1> to vector<16x1xi1>
    %38 = vector.broadcast %37 : vector<16x1xi1> to vector<16x32xi1>
    %39 = arith.select %38, %36, %4 : vector<16x32xi1>, vector<16x32xf32>
    %40 = vector.extract_strided_slice %35 {offsets = [0, 0], sizes = [16, 32], strides = [1, 1]} : vector<16x96xf32> to vector<16x32xf32>
    %41 = arith.negf %40 : vector<16x32xf32>
    %42 = math.exp %41 : vector<16x32xf32>
    %cst_22 = arith.constant 1.000000e+00 : f32
    %43 = vector.broadcast %cst_22 : f32 to vector<16x32xf32>
    %44 = arith.addf %43, %42 : vector<16x32xf32>
    %45 = arith.divf %43, %44 : vector<16x32xf32>
    %46 = vector.extract_strided_slice %35 {offsets = [0, 32], sizes = [16, 32], strides = [1, 1]} : vector<16x96xf32> to vector<16x32xf32>
    %47 = arith.negf %46 : vector<16x32xf32>
    %48 = math.exp %47 : vector<16x32xf32>
    %cst_23 = arith.constant 1.000000e+00 : f32
    %49 = vector.broadcast %cst_23 : f32 to vector<16x32xf32>
    %50 = arith.addf %49, %48 : vector<16x32xf32>
    %51 = arith.divf %49, %50 : vector<16x32xf32>
    %52 = vector.extract_strided_slice %35 {offsets = [0, 64], sizes = [16, 32], strides = [1, 1]} : vector<16x96xf32> to vector<16x32xf32>
    %53 = math.tanh %52 : vector<16x32xf32>
    %54 = arith.mulf %45, %53 : vector<16x32xf32>
    %55 = arith.addf %54, %39 : vector<16x32xf32>
    %56 = math.tanh %55 : vector<16x32xf32>
    %57 = arith.mulf %51, %56 : vector<16x32xf32>
    %58 = vector.shape_cast %25 : vector<16x1xi1> to vector<16x1xi1>
    %59 = vector.broadcast %58 : vector<16x1xi1> to vector<16x32xi1>
    %60 = arith.select %59, %57, %3 : vector<16x32xi1>, vector<16x32xf32>
    %c0_24 = arith.constant 0 : index
    %c0_25 = arith.constant 0 : index
    %61 = vector.load %arg13[%c0_24, %c0_25] : memref<16x32xf32, #tpu.memory_space<vmem>>, vector<16x32xf32>
    tpu.vector_store %arg13[%c0_24, %c0_25], %60 {strides = array<i32>} : memref<16x32xf32, #tpu.memory_space<vmem>>, vector<16x32xf32>,
    %62 = vector.shape_cast %25 : vector<16x1xi1> to vector<16x1xi1>
    %63 = vector.broadcast %62 : vector<16x1xi1> to vector<16x32xi1>
    %64 = arith.select %63, %55, %4 : vector<16x32xi1>, vector<16x32xf32>
    %c0_26 = arith.constant 0 : index
    %c0_27 = arith.constant 0 : index
    %65 = vector.load %arg14[%c0_26, %c0_27] : memref<16x32xf32, #tpu.memory_space<vmem>>, vector<16x32xf32>
    tpu.vector_store %arg14[%c0_26, %c0_27], %64 {strides = array<i32>} : memref<16x32xf32, #tpu.memory_space<vmem>>, vector<16x32xf32>,
    return
  }
  func.func @transform_0(%arg0: i32) -> (i32, i32) {
    %c0_i32 = arith.constant 0 : i32
    %c0_i32_0 = arith.constant 0 : i32
    %c0_i32_1 = arith.constant 0 : i32
    return %c0_i32, %c0_i32_0 : i32, i32
  }
  func.func @transform_1(%arg0: i32) -> (i32, i32) {
    %c0_i32 = arith.constant 0 : i32
    %c0_i32_0 = arith.constant 0 : i32
    %c0_i32_1 = arith.constant 0 : i32
    return %c0_i32, %c0_i32_0 : i32, i32
  }
  func.func @transform_2(%arg0: i32) -> (i32, i32) {
    %c0_i32 = arith.constant 0 : i32
    %c0_i32_0 = arith.constant 0 : i32
    %c0_i32_1 = arith.constant 0 : i32
    return %c0_i32, %c0_i32_0 : i32, i32
  }
  func.func @transform_3(%arg0: i32) -> (i32, i32) {
    %c0_i32 = arith.constant 0 : i32
    %c0_i32_0 = arith.constant 0 : i32
    %c0_i32_1 = arith.constant 0 : i32
    return %c0_i32, %c0_i32_0 : i32, i32
  }
  func.func @transform_4(%arg0: i32) -> (i32, i32) {
    %c0_i32 = arith.constant 0 : i32
    %c0_i32_0 = arith.constant 0 : i32
    %c0_i32_1 = arith.constant 0 : i32
    return %c0_i32, %c0_i32_0 : i32, i32
  }
  func.func @transform_5(%arg0: i32) -> (i32, i32) {
    %c0_i32 = arith.constant 0 : i32
    %c0_i32_0 = arith.constant 0 : i32
    %c0_i32_1 = arith.constant 0 : i32
    return %c0_i32, %c0_i32_0 : i32, i32
  }
  func.func @transform_6(%arg0: i32) -> (i32, i32) {
    %c0_i32 = arith.constant 0 : i32
    %c0_i32_0 = arith.constant 0 : i32
    %c0_i32_1 = arith.constant 0 : i32
    return %c0_i32, %c0_i32_0 : i32, i32
  }
  func.func @transform_7(%arg0: i32) -> (i32, i32) {
    %c0_i32 = arith.constant 0 : i32
    %c0_i32_0 = arith.constant 0 : i32
    %c0_i32_1 = arith.constant 0 : i32
    return %c0_i32, %c0_i32_0 : i32, i32
  }
  func.func @transform_8(%arg0: i32) -> (i32, i32) {
    %c0_i32 = arith.constant 0 : i32
    %c0_i32_0 = arith.constant 0 : i32
    %c0_i32_1 = arith.constant 0 : i32
    return %c0_i32, %c0_i32_0 : i32, i32
  }
  func.func @transform_9(%arg0: i32) -> (i32, i32, i32) {
    %c0_i32 = arith.constant 0 : i32
    %c0_i32_0 = arith.constant 0 : i32
    %c0_i32_1 = arith.constant 0 : i32
    return %arg0, %c0_i32, %c0_i32_0 : i32, i32, i32
  }
  func.func @transform_10(%arg0: i32) -> (i32, i32) {
    %c0_i32 = arith.constant 0 : i32
    %c0_i32_0 = arith.constant 0 : i32
    %c0_i32_1 = arith.constant 0 : i32
    return %c0_i32, %c0_i32_0 : i32, i32
  }
  func.func @transform_11(%arg0: i32) -> (i32, i32) {
    %c0_i32 = arith.constant 0 : i32
    %c0_i32_0 = arith.constant 0 : i32
    %c0_i32_1 = arith.constant 0 : i32
    return %c0_i32, %c0_i32_0 : i32, i32
  }
  func.func @transform_12(%arg0: i32) -> (i32, i32) {
    %c0_i32 = arith.constant 0 : i32
    %c0_i32_0 = arith.constant 0 : i32
    %c0_i32_1 = arith.constant 0 : i32
    return %c0_i32, %c0_i32_0 : i32, i32
  }
  func.func @transform_13(%arg0: i32) -> (i32, i32) {
    %c0_i32 = arith.constant 0 : i32
    %c0_i32_0 = arith.constant 0 : i32
    %c0_i32_1 = arith.constant 0 : i32
    return %c0_i32, %c0_i32_0 : i32, i32
  }
}

</mosaic_0001>

<bundles_post_ra>
// kernel: tpu_custom_call.1
= control target key start
LH: loop header
LB: loop body
LE: loop exit
PB: predicated region body
PF: predicated region fallthrough
CT: control target
= control target key end

     0   :  { %s2012_s0 = inlined_call_operand.vmem [shape: f32[16,16], index: 0, kind: input, shape index: {}]   ;;  %s2013_s1 = inlined_call_operand.vmem [shape: f32[16,32], index: 1, kind: input, shape index: {}]   ;;  %s2014_s2 = inlined_call_operand.hbm [shape: bf16[16,96], index: 2, kind: input, shape index: {}]   ;;  %s2015_s3 = inlined_call_operand.hbm [shape: bf16[32,96], index: 3, kind: input, shape index: {}]   ;;  %s2016_s4 = inlined_call_operand.hbm [shape: bf16[32,128], index: 4, kind: input, shape index: {}]   ;;  %s2017_s5 = inlined_call_operand.hbm [shape: f32[16,32], index: 5, kind: input, shape index: {}]   ;;  %s2018_s6 = inlined_call_operand.hbm [shape: f32[16,96], index: 6, kind: input, shape index: {}]   ;;  %s2019_s7 = inlined_call_operand.vmem [shape: s32[16,1], index: 7, kind: input, shape index: {}]   ;;  %s2020_s8 = inlined_call_operand.vmem [shape: s32[16,1], index: 8, kind: input, shape index: {}]   ;;  %s2021_s9 = inlined_call_operand.vmem [shape: bf16[4,16,16], index: 9, kind: input, shape index: {}]   ;;  %s2022_s10 = inlined_call_operand.hbm [shape: f32[16,32], index: 10, kind: input, shape index: {}]   ;;  %s2023_s11 = inlined_call_operand.hbm [shape: f32[16,32], index: 11, kind: input, shape index: {}]   ;;  %s2024_s12 = inlined_call_operand.hbm [shape: f32[16,32], index: 12, kind: output, shape index: {0}]   ;;  %s2025_s13 = inlined_call_operand.hbm [shape: f32[16,32], index: 13, kind: output, shape index: {1}]  }
   0x1   :  { %2038 = sst [smem:[#allocation25_spill]] %s2015_s3 }
   0x2   :  { %2039 = sst [smem:[#allocation26_spill]] %s2024_s12 }
   0x3   :  { %19 = vsyncpa [#allocation4], 0 }
   0x4   :  { %20 = vsyncpa [#allocation7], 0 }
   0x5   :  { %21 = vsyncpa [#allocation10], 0 }
   0x6   :  { %22 = vsyncpa [#allocation13], 0 }
   0x7   :  { %23 = vsyncpa [#allocation5], 0 }
   0x8   :  { %24 = vsyncpa [#allocation17], 0  ;;  %s1664_s25 = smov 0  }
   0x9 LB: > { %2040 = sst [smem:[#allocation24_spill]] %s1569_s25  ;;  %s1670_s26 = sadd.s32 4294967295, %s1569_s25   ;;  %s1569_s25 = sphi %s1664_s25, %s30_s25  }
   0xa   : > { %p1071_p0 = scmp.ge.s32.totalorder %s1569_s25, 1  ;;  %p334_p1 = scmp.lt.s32.totalorder %s1569_s25, 5 }
   0xb   : > { %p2032_p3 = scmp.eq.s32.totalorder %s1670_s26, 0  ;;  %s1571_s28 = smov [#allocation6]  }
   0xc   : > { %p1676_p4 = pnand %p1071_p0, %p334_p1  ;;  %s365_s29 = sshll.u32 %s1571_s28, 4  ;;  %s1680_s29 = int_to_ptr.vmem [resolvable:$true] %s365_s29 }
   0xd   : > { %s1572_s30 = smov [#allocation9]   ;;  %s1573_s16 = smov [#allocation12]  }
   0xe   : > { %s2041_s27 = scalar_select %p1676_p4, 1, 0 }
   0xf   : > { %p1188_p5 = pneg %p1676_p4  ;;  %s391_s14 = sshll.u32 %s1572_s30, 4  ;;  %s1684_s14 = int_to_ptr.vmem [resolvable:$true] %s391_s14 }
  0x10   : > { %s1692_s17 = sshll.u32 %s1573_s16, 4  ;;  %s2043_s3 = sld [smem:[#allocation25_spill]]  ;;  %s424_s17 = int_to_ptr.vmem [resolvable:$true] %s1692_s17 }
  0x11   : > { %p1688_p6 = pnand %p2032_p3, %p1188_p5 }
  0x13   : > { %p1702_p8 = pneg %p1688_p6 }
  0x16   : > { %s1291_s20 = scalar_lea.hbm %s2043_s3, 256 }
  0x17   : > { %p1292_p7 = scmp.ne.s32.totalorder %s2043_s3, %s1291_s20  ;;  %p1298_p11 = scmp.lt.u32.totalorder %s1291_s20, %s2043_s3 }
  0x19   : > { %p1294_p9 = pnand %p1702_p8, %p1292_p7 }
  0x1b   : > { %p1295_p10 = pneg %p1294_p9 }
  0x1d   : > { %p1300_p12 = pnand %p1298_p11, %p1295_p10 }
  0x1f   : > { %1303 = shalt.err (!%p1300_p12)
}
  0x20   : > { %s1304_s30 = scalar_lea.vmem %s1680_s29, 256  ;;  %p1312_p5 = scmp.lt.s32.totalorder %s1680_s29, %s1680_s29 }
  0x21   : > { %p1305_p13 = scmp.ne.s32.totalorder %s1680_s29, %s1304_s30  ;;  %p1313_p2 = scmp.lt.s32.totalorder %s1304_s30, %s1304_s30 }
  0x23   : > { %p1307_p0 = pnand %p1305_p13, %p1702_p8  ;;  %p1314_p7 = por %p1313_p2, %p1312_p5 }
  0x25   : > { %p1308_p1 = pneg %p1307_p0 }
  0x27   : > { %p1315_p9 = pnand %p1314_p7, %p1308_p1 }
  0x29   : > { %1318 = shalt.err (!%p1315_p9)
}
  0x2a   : > { %s2028_s16 = smov 64   ;;  %s2030_s18 = smov 4  }
  0x2b   : > { %1194 = dma.hbm_to_vmem [thread:$0]  (!%p1688_p6), %s2043_s3, 256, %s1680_s29, [#allocation7], %s2028_s16, %s2028_s16, %s2030_s18  }
  0x2c   : > { %s1319_s24 = scalar_lea.hbm %s2017_s5, 256 }
  0x2d   : > { %p1320_p2 = scmp.ne.s32.totalorder %s2017_s5, %s1319_s24  ;;  %p1326_p12 = scmp.lt.u32.totalorder %s1319_s24, %s2017_s5 }
  0x2f   : > { %p1322_p10 = pnand %p1320_p2, %p1702_p8 }
  0x31   : > { %p1323_p11 = pneg %p1322_p10 }
  0x33   : > { %p1328_p13 = pnand %p1326_p12, %p1323_p11 }
  0x35   : > { %1331 = shalt.err (!%p1328_p13)
}
  0x36   : > { %s1332_s29 = scalar_lea.vmem %s1684_s14, 256  ;;  %p1340_p7 = scmp.lt.s32.totalorder %s1684_s14, %s1684_s14 }
  0x37   : > { %p1333_p0 = scmp.ne.s32.totalorder %s1684_s14, %s1332_s29  ;;  %p1341_p9 = scmp.lt.s32.totalorder %s1332_s29, %s1332_s29 }
  0x39   : > { %p1335_p1 = pnand %p1333_p0, %p1702_p8  ;;  %p1342_p2 = por %p1341_p9, %p1340_p7 }
  0x3b   : > { %p1336_p5 = pneg %p1335_p1 }
  0x3d   : > { %p1343_p10 = pnand %p1342_p2, %p1336_p5 }
  0x3f   : > { %1346 = shalt.err (!%p1343_p10)
}
  0x40   : > { %s2034_s19 = smov 128   ;;  %s2036_s12 = smov 8  }
  0x41   : > { %1200 = dma.hbm_to_vmem [thread:$0]  (!%p1688_p6), %s2017_s5, 256, %s1684_s14, [#allocation10], %s2034_s19, %s2034_s19, %s2036_s12  }
  0x42   : > { %s1578_s21 = smov [#allocation3]   ;;  %s1347_s30 = scalar_lea.hbm %s2022_s10, 256 }
  0x43   : > { %s352_s22 = sshll.u32 %s1578_s21, 4  ;;  %p1348_p11 = scmp.ne.s32.totalorder %s2022_s10, %s1347_s30  ;;  %s353_s22 = int_to_ptr.vmem [resolvable:$true] %s352_s22 }
  0x44   : > { %p1354_p0 = scmp.lt.u32.totalorder %s1347_s30, %s2022_s10 }
  0x45   : > { %p1350_p12 = pnand %p1348_p11, %p1702_p8 }
  0x47   : > { %p1351_p13 = pneg %p1350_p12 }
  0x49   : > { %p1356_p1 = pnand %p1354_p0, %p1351_p13 }
  0x4b   : > { %1359 = shalt.err (!%p1356_p1)
}
  0x4c   : > { %s1360_s14 = scalar_lea.vmem %s424_s17, 256  ;;  %p1368_p2 = scmp.lt.s32.totalorder %s424_s17, %s424_s17 }
  0x4d   : > { %p1361_p5 = scmp.ne.s32.totalorder %s424_s17, %s1360_s14  ;;  %p1369_p10 = scmp.lt.s32.totalorder %s1360_s14, %s1360_s14 }
  0x4f   : > { %p1363_p7 = pnand %p1361_p5, %p1702_p8  ;;  %p1370_p3 = por %p1369_p10, %p1368_p2 }
  0x51   : > { %p1364_p9 = pneg %p1363_p7 }
  0x53   : > { %p1371_p4 = pnand %p1370_p3, %p1364_p9 }
  0x55   : > { %1374 = shalt.err (!%p1371_p4)
}
  0x56   : > { %1206 = dma.hbm_to_vmem [thread:$0]  (!%p1688_p6), %s2022_s10, 256, %s424_s17, [#allocation13], %s2034_s19, %s2034_s19, %s2036_s12  }
  0x57   : > { %s1375_s20 = scalar_lea.hbm %s2014_s2, 128 }
  0x58   : > { %p1376_p3 = scmp.ne.s32.totalorder %s2014_s2, %s1375_s20  ;;  %p1382_p12 = scmp.lt.u32.totalorder %s1375_s20, %s2014_s2 }
  0x5a   : > { %p1378_p4 = pnand %p1376_p3, %p1702_p8 }
  0x5c   : > { %p1379_p11 = pneg %p1378_p4 }
  0x5e   : > { %p1384_p13 = pnand %p1382_p12, %p1379_p11 }
  0x60   : > { %1387 = shalt.err (!%p1384_p13)
}
  0x61   : > { %s1388_s29 = scalar_lea.vmem %s353_s22, 128  ;;  %p1396_p7 = scmp.lt.s32.totalorder %s353_s22, %s353_s22 }
  0x62   : > { %p1389_p0 = scmp.ne.s32.totalorder %s353_s22, %s1388_s29  ;;  %p1397_p9 = scmp.lt.s32.totalorder %s1388_s29, %s1388_s29 }
  0x64   : > { %p1391_p1 = pnand %p1389_p0, %p1702_p8  ;;  %p1398_p2 = por %p1397_p9, %p1396_p7 }
  0x66   : > { %p1392_p5 = pneg %p1391_p1 }
  0x68   : > { %p1399_p10 = pnand %p1398_p2, %p1392_p5 }
  0x6a   : > { %1402 = shalt.err (!%p1399_p10)
}
  0x6b   : > { %s2045_s17 = smov 4   ;;  %s2046_s14 = smov 64  }
  0x6c   : > { %1191 = dma.hbm_to_vmem [thread:$0]  (!%p1688_p6), %s2014_s2, 128, %s353_s22, [#allocation4], %s2046_s14, %s2046_s14, %s2045_s17  }
  0x6d   : > { %s1579_s18 = smov [#allocation8]   ;;  %s1580_s20 = smov [#allocation11]  }
  0x6e   : > { %s378_s25 = sshll.u32 %s1579_s18, 4  ;;  %s404_s21 = sshll.u32 %s1580_s20, 4  ;;  %s379_s25 = int_to_ptr.vmem [resolvable:$true] %s378_s25  ;;  %s405_s21 = int_to_ptr.vmem [resolvable:$true] %s404_s21 }
  0x6f   : > { %s1403_s30 = scalar_lea.hbm %s2016_s4, 256 }
  0x70   : > { %p1404_p3 = scmp.ne.s32.totalorder %s2016_s4, %s1403_s30  ;;  %p1410_p12 = scmp.lt.u32.totalorder %s1403_s30, %s2016_s4 }
  0x72   : > { %p1406_p4 = pnand %p1404_p3, %p1702_p8 }
  0x74   : > { %p1407_p11 = pneg %p1406_p4 }
  0x76   : > { %p1412_p13 = pnand %p1410_p12, %p1407_p11 }
  0x78   : > { %1415 = shalt.err (!%p1412_p13)
}
  0x79   : > { %s1416_s22 = scalar_lea.vmem %s379_s25, 256  ;;  %p1424_p7 = scmp.lt.s32.totalorder %s379_s25, %s379_s25 }
  0x7a   : > { %p1417_p0 = scmp.ne.s32.totalorder %s379_s25, %s1416_s22  ;;  %p1425_p9 = scmp.lt.s32.totalorder %s1416_s22, %s1416_s22 }
  0x7c   : > { %p1419_p1 = pnand %p1417_p0, %p1702_p8  ;;  %p1426_p2 = por %p1425_p9, %p1424_p7 }
  0x7e   : > { %p1420_p5 = pneg %p1419_p1 }
  0x80   : > { %p1427_p10 = pnand %p1426_p2, %p1420_p5 }
  0x82   : > { %1430 = shalt.err (!%p1427_p10)
}
  0x83   : > { %1197 = dma.hbm_to_vmem [thread:$0]  (!%p1688_p6), %s2016_s4, 256, %s379_s25, [#allocation7], %s2046_s14, %s2046_s14, %s2045_s17  }
  0x84   : > { %s1431_s20 = scalar_lea.hbm %s2018_s6, 256 }
  0x85   : > { %p1432_p3 = scmp.ne.s32.totalorder %s2018_s6, %s1431_s20  ;;  %p1438_p12 = scmp.lt.u32.totalorder %s1431_s20, %s2018_s6 }
  0x87   : > { %p1434_p4 = pnand %p1432_p3, %p1702_p8 }
  0x89   : > { %p1435_p11 = pneg %p1434_p4 }
  0x8b   : > { %p1440_p13 = pnand %p1438_p12, %p1435_p11 }
  0x8d   : > { %1443 = shalt.err (!%p1440_p13)
}
  0x8e   : > { %s1444_s3 = scalar_lea.vmem %s405_s21, 256  ;;  %p1452_p7 = scmp.lt.s32.totalorder %s405_s21, %s405_s21 }
  0x8f   : > { %p1445_p0 = scmp.ne.s32.totalorder %s405_s21, %s1444_s3  ;;  %p1453_p9 = scmp.lt.s32.totalorder %s1444_s3, %s1444_s3 }
  0x91   : > { %p1447_p1 = pnand %p1445_p0, %p1702_p8  ;;  %p1454_p2 = por %p1453_p9, %p1452_p7 }
  0x93   : > { %p1448_p5 = pneg %p1447_p1 }
  0x95   : > { %p1455_p10 = pnand %p1454_p2, %p1448_p5 }
  0x97   : > { %1458 = shalt.err (!%p1455_p10)
}
  0x98   : > { %s2047_s17 = smov 8   ;;  %s2048_s14 = smov 128  }
  0x99   : > { %1203 = dma.hbm_to_vmem [thread:$0]  (!%p1688_p6), %s2018_s6, 256, %s405_s21, [#allocation10], %s2048_s14, %s2048_s14, %s2047_s17  }
  0x9a   : > { %s1581_s19 = smov [#allocation14]   ;;  %s1459_s20 = scalar_lea.hbm %s2023_s11, 256 }
  0x9b   : > { %s436_s12 = sshll.u32 %s1581_s19, 4  ;;  %p1460_p3 = scmp.ne.s32.totalorder %s2023_s11, %s1459_s20  ;;  %s437_s12 = int_to_ptr.vmem [resolvable:$true] %s436_s12 }
  0x9c   : > { %p1466_p12 = scmp.lt.u32.totalorder %s1459_s20, %s2023_s11 }
  0x9d   : > { %p1462_p4 = pnand %p1460_p3, %p1702_p8 }
  0x9f   : > { %p1463_p11 = pneg %p1462_p4 }
  0xa1   : > { %p1468_p13 = pnand %p1466_p12, %p1463_p11 }
  0xa3   : > { %1471 = shalt.err (!%p1468_p13)
}
  0xa4   : > { %s1472_s21 = scalar_lea.vmem %s437_s12, 256  ;;  %p1480_p7 = scmp.lt.s32.totalorder %s437_s12, %s437_s12 }
  0xa5   : > { %p1473_p0 = scmp.ne.s32.totalorder %s437_s12, %s1472_s21  ;;  %p1481_p9 = scmp.lt.s32.totalorder %s1472_s21, %s1472_s21 }
  0xa7   : > { %p1475_p1 = pnand %p1473_p0, %p1702_p8  ;;  %p1482_p2 = por %p1481_p9, %p1480_p7 }
  0xa9   : > { %p1476_p5 = pneg %p1475_p1 }
  0xab   : > { %p1483_p10 = pnand %p1482_p2, %p1476_p5 }
  0xad   : > { %1486 = shalt.err (!%p1483_p10)
}
  0xae   : > { %1209 = dma.hbm_to_vmem [thread:$0]  (!%p1688_p6), %s2023_s11, 256, %s437_s12, [#allocation13], %s2048_s14, %s2048_s14, %s2047_s17  }
  0xaf   : > { %p2049_p3 = scmp.ne.s32.totalorder %s2041_s27, 0 }
  0xb0   : > { %p2050_p8 = scmp.eq.s32.totalorder (!%p2049_p3), %s1670_s26, 0 }
  0xb1   : > { %460 = sbr.rel (%p2049_p3) target bundleno = 1300 (0x514), region = 68 }
  0xb8   : > { %1544 = dma.done.wait (%p2050_p8), [#allocation4], 128   ;;  %p2051_p4 = pmov %p2050_p8 }
  0xba   : > { %1546 = vsyncadd (%p2051_p4), [#allocation4], 4294967168  ;;  %p2052_p11 = pmov %p2051_p4 }
  0xbb   : > { %p2053_p12 = pmov %p2051_p4 }
  0xbc   : > { %1548 = dma.done.wait (%p2052_p11), [#allocation7], 512  }
  0xbd   : > { %1550 = vsyncadd (%p2053_p12), [#allocation7], 4294966784  ;;  %p2054_p13 = pmov %p2051_p4 }
  0xbe   : > { %p2055_p6 = pmov %p2051_p4 }
  0xbf   : > { %1552 = dma.done.wait (%p2054_p13), [#allocation10], 512  }
  0xc0   : > { %1554 = vsyncadd (%p2055_p6), [#allocation10], 4294966784  ;;  %p2056_p0 = pmov %p2051_p4 }
  0xc2   : > { %1556 = dma.done.wait (%p2056_p0), [#allocation13], 512   ;;  %p2057_p1 = pmov %p2056_p0 }
  0xc3   : > { %p523_p5 = scmp.lt.s32.totalorder %s1670_s26, 3  ;;  %p2058_p7 = scmp.ne.s32.totalorder %s1670_s26, 0 }
  0xc4   : > { %1558 = vsyncadd (%p2057_p1), [#allocation13], 4294966784  ;;  %v1259_v0 = vld [vmem:[#allocation6] sm:$0xff] (!%p2058_p7)   ;;  %v1582_v1 = vmov (!%p2058_p7), 0.0   ;;  %v1260_v2 = vld [vmem:[#allocation3] sm:$0xff] (!%p2058_p7)   ;;  %vm1583_vm0 = vmmov (!%p2058_p7), 0  }
  0xc5   : > { %s524_s27 = scalar_select %p523_p5, %s1670_s26, 3 }
  0xc6   : > { %532 = sbr.rel (%p2058_p7) target bundleno = 423 (0x1a7), region = 100  ;;  %1122 = vmatprep.subr.bf16.mxu1 (!%p2058_p7), %v1582_v1  ;;  %1130 = vmatprep.subr.bf16.mxu0 (!%p2058_p7), %v1582_v1  ;;  %v1261_v3 = vld [vmem:[#allocation6 + $0x8] sm:$0xff] (!%p2058_p7)   ;;  %v543_v5 = vld [vmem:[%s2012_s0 + $0x8] sm:$0xff] (!%p2058_p7)  ;;  %vm616_vm1 = vcmask (!%p2058_p7), 130048   ;;  %v533_v6 = vld [vmem:[#allocation12] sm:$0xff] (!%p2058_p7)  ;;  %vm535_vm2 = vcmask (!%p2058_p7), 261120  }
  0xc7   : > { %s1111_s15 = sshll.u32 %s524_s27, 3  ;;  %1123 = vmatpush3.bf16.msra.mxu1 (!%p2058_p7), %v1259_v0  ;;  %1132 = vmatprep.mubr.msk.bf16.mxu0 (!%p2058_p7), %vm1583_vm0, %v1582_v1  ;;  %v542_v4 = vld [vmem:[%s2012_s0] sm:$0xff] (!%p2058_p7)  ;;  %536 = vst.msk [vmem:[#allocation15] sm:$0xff] (!%p2058_p7), %vm535_vm2, %v533_v6  ;;  %v538_v9 = vld [vmem:[#allocation14] sm:$0xff] (!%p2058_p7)  ;;  %v539_v10 = vld [vmem:[#allocation14 + $0x8] sm:$0xff] (!%p2058_p7)  ;;  %vm661_vm3 = vcmask (!%p2058_p7), 785408  }
  0xc8   : > { %s1881_s14 = scalar_lea.vmem %s2021_s9, %s1111_s15  ;;  %1131 = vmatpush3.bf16.msra.mxu0 (!%p2058_p7), %v1260_v2  ;;  %1124 = vmatprep.subr.bf16.mxu1 (!%p2058_p7), %v1582_v1  ;;  %v544_v7 = vpack.c.bf16 (!%p2058_p7), %v543_v5, %v542_v4  ;;  %v534_v8 = vld [vmem:[#allocation12 + $0x8] sm:$0xff] (!%p2058_p7)  ;;  %540 = vst.msk [vmem:[#allocation16] sm:$0xff] (!%p2058_p7), %vm535_vm2, %v538_v9  ;;  %541 = vst.msk [vmem:[#allocation16 + $0x8] sm:$0xff] (!%p2058_p7), %vm535_vm2, %v539_v10  ;;  %v548_v12 = vld [vmem:[%s2013_s1 + $0x8] sm:$0xff] (!%p2058_p7) }
  0xc9   : > { %1126 = vmatprep.mubr.msk.bf16.mxu1 (!%p2058_p7), %vm1583_vm0, %v1582_v1  ;;  %537 = vst.msk [vmem:[#allocation15 + $0x8] sm:$0xff] (!%p2058_p7), %vm535_vm2, %v534_v8  ;;  %v547_v11 = vld [vmem:[%s2013_s1] sm:$0xff] (!%p2058_p7) }
  0xca   : > { %v549_v13 = vpack.c.bf16 (!%p2058_p7), %v548_v12, %v547_v11 }
  0xcb   : > { %1125 = vmatpush3.bf16.msra.mxu1 (!%p2058_p7), %v1261_v3  ;;  %1133 = vmatmul.mubr.msk.bf16.vlgmr.msra.gmra.mrb[0].mxu0 (!%p2058_p7), %vm616_vm1, %v544_v7 }
  0xce   : > { %1127 = vmatmul.mubr.msk.bf16.vlgmr.msra.gmra.mrb[0].mxu1 %vm535_vm2, %v549_v13 }
 0x19e   : > { %v654_v14 = vpop.f32.mrb[0].mxu0 }
 0x19f   : > { %v1134_v15 = vpop.f32.mrb[1].mxu0 }
 0x1a0   : > { %v657_v16 = vpop.f32.mrb[2].mxu0 }
 0x1a1   : > { %v603_v17 = vpop.f32.mrb[0].mxu1  ;;  %v1135_v18 = vpop.f32.mrb[3].mxu0 }
 0x1a2   : > { %v655_v19 = vadd.f32 %v654_v14, %v603_v17  ;;  %v1128_v20 = vpop.f32.mrb[1].mxu1 }
 0x1a3   : > { %v606_v21 = vpop.f32.mrb[2].mxu1 }
 0x1a4   : > { %662 = vst.msk [vmem:[#allocation2] sm:$0xff] %vm661_vm3, %v655_v19  ;;  %v658_v22 = vadd.f32 %v657_v16, %v606_v21  ;;  %v1129_v23 = vpop.f32.mrb[3].mxu1 }
 0x1a6   : > { %663 = vst.msk [vmem:[#allocation2 + $0x8] sm:$0xff] %vm661_vm3, %v658_v22 }
 0x1a7 PF: > { %v1264_v24 = vld [vmem:[#allocation8] sm:$0xff]   ;;  %v1584_v25 = vmov 0.0   ;;  %v1265_v26 = vld [vmem:[#allocation8 + $0x8] sm:$0xff]   ;;  %vm1585_vm4 = vmmov 0   ;;  %v732_v29 = vld [vmem:[#allocation9] sm:$0xff]  ;;  %s1586_s30 = smov 96   ;;  %v822_v15 = vstv %s1670_s26 }
 0x1a8   : > { %1136 = vmatprep.subr.bf16.mxu0 %v1584_v25  ;;  %1144 = vmatprep.subr.bf16.mxu1 %v1584_v25  ;;  %v1897_v27 = vld [vmem:[#allocation15] sm:$0xff]  ;;  %v733_v31 = vld [vmem:[#allocation9 + $0x8] sm:$0xff]  ;;  %vm687_vm5 = vcmask 261120   ;;  %v826_v35 = vld [vmem:[%s2020_s8 + $0x8] sm:$0xff]  ;;  %v1587_v36 = vmov 0   ;;  %vm766_vm8 = vcmask 785408  }
 0x1a9   : > { %1137 = vmatpush3.bf16.msra.mxu0 %v1264_v24  ;;  %1140 = vmatprep.mubr.msk.bf16.mxu0 %vm1585_vm4, %v1584_v25  ;;  %v1902_v30 = vld [vmem:[#allocation16] sm:$0xff]  ;;  %v1908_v33 = vld [vmem:[#allocation16 + $0x8] sm:$0xff]  ;;  %v825_v34 = vld [vmem:[%s2020_s8] sm:$0xff]  ;;  %vm828_vm7 = vcmp.gt.s32.totalorder %v826_v35, 0  ;;  %vm775_vm9 = vcmask 130048   ;;  %s1588_s23 = smov 64  }
 0x1aa   : > { %v1899_v28 = vld [vmem:[#allocation15 + $0x8] sm:$0xff]  ;;  %1138 = vmatprep.subr.bf16.mxu0 %v1584_v25  ;;  %736 = vrot.lane.b32.xlu0 %v732_v29, %s1586_s30  ;;  %vm827_vm6 = vcmp.gt.s32.totalorder %v825_v34, 0  ;;  %v832_v38 = vsel %vm828_vm7, 1, %v1587_v36  ;;  %v843_v2 = vld [vmem:[#allocation11] sm:$0xff]  ;;  %v844_v7 = vld [vmem:[#allocation11 + $0x8] sm:$0xff]  ;;  %s1589_s22 = smov 32  }
 0x1ab   : > { %758 = vrot.lane.b32.xlu1 %v1902_v30, %s1586_s30  ;;  %1146 = vmatprep.mubr.msk.bf16.mxu1 %vm1585_vm4, %v1584_v25  ;;  %v670_v32 = vpack.c.bf16 %v1899_v28, %v1897_v27  ;;  %v831_v37 = vsel %vm827_vm6, 1, %v1587_v36  ;;  %v1266_v62 = vld [vmem:[%s1881_s14] sm:$0xff]   ;;  %v821_v17 = vld [vmem:[%s2019_s7 + $0x8] sm:$0xff]  ;;  %p1224_p9 = scmp.eq.s32.totalorder %s1670_s26, 3  ;;  %s1590_s19 = smov [#allocation16]  }
 0x1ac   : > { %1262 = vset.pattern.permute.xlu0 %v1587_v36  ;;  %1263 = vset.pattern.permute.xlu1 %v1587_v36  ;;  %v829_v1 = vld [vmem:[#allocation2] sm:$0xff]  ;;  %vm824_vm13 = vcmp.eq.s32.totalorder %v821_v17, %v822_v15  ;;  %s948_s12 = sshll.u32 %s1590_s19, 4  ;;  %s949_s12 = int_to_ptr.vmem [resolvable:$true] %s948_s12 }
 0x1ad   : > { %1139 = vmatpush3.bf16.msra.mxu0 %v1265_v26  ;;  %v830_v4 = vld [vmem:[#allocation2 + $0x8] sm:$0xff]  ;;  %v820_v14 = vld [vmem:[%s2019_s7] sm:$0xff]  ;;  %v896_v21 = vsel %vm824_vm13, 1, %v1587_v36  ;;  %s1487_s16 = scalar_lea.vmem %s949_s12, 256  ;;  %p1494_p8 = scmp.lt.s32.totalorder %s949_s12, %s949_s12 }
 0x1ae   : > { %738 = vrot.lane.b32.xlu0 %v733_v31, %s1586_s30  ;;  %vm823_vm12 = vcmp.eq.s32.totalorder %v820_v14, %v822_v15  ;;  %p1488_p2 = scmp.ne.s32.totalorder %s949_s12, %s1487_s16  ;;  %p1495_p4 = scmp.lt.s32.totalorder %s1487_s16, %s1487_s16 }
 0x1af   : > { %760 = vrot.lane.b32.xlu1 %v1908_v33, %s1586_s30  ;;  %v895_v19 = vsel %vm823_vm12, 1, %v1587_v36 }
 0x1b0   : > { %1141 = vmatmul.mubr.msk.bf16.vlgmr.msra.gmra.mrb[0].mxu0 %vm687_vm5, %v670_v32  ;;  %p1489_p10 = pnand %p1488_p2, %p1224_p9  ;;  %p1496_p11 = por %p1495_p4, %p1494_p8 }
 0x1b2   : > { %834 = vperm.xlu0 %1262, %v831_v37   ;;  %p1490_p3 = pneg %p1489_p10 }
 0x1b3   : > { %837 = vperm.xlu1 %1263, %v832_v38  }
 0x1b4   : > { %p1497_p12 = pnand %p1496_p11, %p1490_p3 }
 0x21c   : > { %v737_v39 = vpop.permute.xlu0 %736 }
 0x21d   : > { %v759_v53 = vpop.permute.xlu1 %758 }
 0x220   : > { %v739_v41 = vpop.permute.xlu0 %738 }
 0x221   : > { %v761_v55 = vpop.permute.xlu1 %760 }
 0x231   : > { %v835_v63 = vpop.permute.xlu0 %834 }
 0x232   : > { %v838_v0 = vpop.permute.xlu1 %837  ;;  %vm839_vm10 = vcmp.eq.s32.totalorder %v835_v63, 1 }
 0x233   : > { %vm840_vm11 = vcmp.eq.s32.totalorder %v838_v0, 1 }
 0x283   : > { %v725_v40 = vpop.f32.mrb[0].mxu0 }
 0x284   : > { %v742_v42 = vadd.f32 %v737_v39, %v725_v40  ;;  %v1142_v43 = vpop.f32.mrb[1].mxu0 }
 0x285   : > { %v728_v44 = vpop.f32.mrb[2].mxu0 }
 0x286   : > { %v1099_v45 = vmul.f32 -1.442695, %v742_v42  ;;  %v743_v46 = vadd.f32 %v739_v41, %v728_v44  ;;  %v1143_v47 = vpop.f32.mrb[3].mxu0 }
 0x288   : > { %1267 = vpow2.f32 %v1099_v45  ;;  %v1100_v48 = vmul.f32 -1.442695, %v743_v46 }
 0x28a   : > { %1269 = vpow2.f32 %v1100_v48 }
 0x292   : > { %v1268_v49 = vpop.eup %1267 }
 0x293   : > { %v750_v50 = vadd.f32 1.0, %v1268_v49 }
 0x294   : > { %v1270_v51 = vpop.eup %1269 }
 0x295   : > { %1271 = vrcp.f32 %v750_v50  ;;  %v751_v52 = vadd.f32 1.0, %v1270_v51 }
 0x297   : > { %1273 = vrcp.f32 %v751_v52 }
 0x29f   : > { %v1272_v54 = vpop.eup %1271 }
 0x2a0   : > { %v764_v56 = vmul.f32 %v1272_v54, %v759_v53 }
 0x2a1   : > { %v1274_v57 = vpop.eup %1273 }
 0x2a2   : > { %v765_v58 = vmul.f32 %v1274_v57, %v761_v55  ;;  %v767_v59 = vsel %vm766_vm8, %v725_v40, %v764_v56 }
 0x2a4   : > { %v768_v60 = vsel %vm766_vm8, %v728_v44, %v765_v58 }
 0x2a5   : > { %v769_v61 = vpack.c.bf16 %v768_v60, %v767_v59 }
 0x2a7   : > { %1145 = vmatpush3.bf16.msra.mxu1 %v769_v61 }
 0x2aa   : > { %1147 = vmatmul.mubr.msk.bf16.vlgmr.msra.gmra.mrb[0].mxu1 %vm775_vm9, %v1266_v62 }
 0x37d   : > { %v813_v3 = vpop.f32.mrb[0].mxu1 }
 0x37e   : > { %v841_v5 = vsel %vm839_vm10, %v813_v3, %v829_v1  ;;  %v1148_v6 = vpop.f32.mrb[1].mxu1  ;;  %v847_v18 = vsel %vm839_vm10, %v813_v3, %v759_v53 }
 0x37f   : > { %v845_v8 = vadd.f32 %v843_v2, %v841_v5  ;;  %v816_v9 = vpop.f32.mrb[2].mxu1 }
 0x380   : > { %v842_v10 = vsel %vm840_vm11, %v816_v9, %v830_v4  ;;  %v1149_v11 = vpop.f32.mrb[3].mxu1  ;;  %v848_v20 = vsel %vm840_vm11, %v816_v9, %v761_v55 }
 0x381   : > { %1275 = vtanh.f32 %v845_v8  ;;  %v846_v12 = vadd.f32 %v844_v7, %v842_v10  ;;  %v1103_v22 = vmul.f32 -1.442695, %v845_v8 }
 0x383   : > { %1277 = vtanh.f32 %v846_v12  ;;  %v1104_v23 = vmul.f32 -1.442695, %v846_v12 }
 0x384   : > { %1279 = vpow2.f32 %v1103_v22 }
 0x385   : > { %1281 = vpow2.f32 %v1104_v23 }
 0x38b   : > { %v1276_v13 = vpop.eup %1275 }
 0x38c   : > { %865 = vrot.lane.b32.xlu1 %v1276_v13, %s1588_s23 }
 0x38d   : > { %v1278_v16 = vpop.eup %1277 }
 0x38e   : > { %867 = vrot.lane.b32.xlu0 %v1278_v16, %s1588_s23  ;;  %v1280_v24 = vpop.eup %1279 }
 0x38f   : > { %v1282_v25 = vpop.eup %1281  ;;  %v855_v26 = vadd.f32 1.0, %v1280_v24 }
 0x390   : > { %875 = vrot.lane.b32.xlu1 %v847_v18, %s1589_s22  ;;  %v856_v29 = vadd.f32 1.0, %v1282_v25 }
 0x391   : > { %1283 = vrcp.f32 %v855_v26 }
 0x392   : > { %877 = vrot.lane.b32.xlu0 %v848_v20, %s1589_s22  ;;  %1285 = vrcp.f32 %v856_v29 }
 0x394   : > { %898 = vperm.xlu1 %1263, %v895_v19  }
 0x396   : > { %901 = vperm.xlu0 %1262, %v896_v21  }
 0x39b   : > { %v1284_v32 = vpop.eup %1283 }
 0x39c   : > { %v1286_v38 = vpop.eup %1285 }
 0x3fe   : > { %v866_v31 = vpop.permute.xlu1 %865 }
 0x3ff   : > { %v871_v34 = vmul.f32 %v1284_v32, %v866_v31 }
 0x400   : > { %v868_v35 = vpop.permute.xlu0 %867 }
 0x401   : > { %v872_v40 = vmul.f32 %v1286_v38, %v868_v35 }
 0x402   : > { %v876_v37 = vpop.permute.xlu1 %875 }
 0x403   : > { %v881_v39 = vadd.f32 %v876_v37, %v871_v34 }
 0x404   : > { %v878_v36 = vpop.permute.xlu0 %877 }
 0x405   : > { %1287 = vtanh.f32 %v881_v39  ;;  %v882_v41 = vadd.f32 %v878_v36, %v872_v40 }
 0x407   : > { %1289 = vtanh.f32 %v882_v41 }
 0x40f   : > { %v1288_v42 = vpop.eup %1287 }
 0x410   : > { %887 = vrot.lane.b32.xlu1 %v1288_v42, %s1589_s22 }
 0x411   : > { %v1290_v43 = vpop.eup %1289 }
 0x412   : > { %889 = vrot.lane.b32.xlu0 %v1290_v43, %s1589_s22 }
 0x413   : > { %v899_v44 = vpop.permute.xlu1 %898 }
 0x414   : > { %vm903_vm14 = vcmp.eq.s32.totalorder %v899_v44, 1  ;;  %907 = vrot.lane.b32.xlu1 %v1897_v27, %s1589_s22 }
 0x415   : > { %v925_v45 = vsel %vm903_vm14, %v881_v39, %v1902_v30  ;;  %v902_v46 = vpop.permute.xlu0 %901 }
 0x416   : > { %927 = vst.msk [vmem:[#allocation16] sm:$0xff] %vm687_vm5, %v925_v45  ;;  %vm904_vm15 = vcmp.eq.s32.totalorder %v902_v46, 1  ;;  %909 = vrot.lane.b32.xlu0 %v1899_v28, %s1589_s22 }
 0x417   : > { %v926_v47 = vsel %vm904_vm15, %v882_v41, %v1908_v33 }
 0x418   : > { %928 = vst.msk [vmem:[#allocation16 + $0x8] sm:$0xff] %vm687_vm5, %v926_v47 }
 0x419   : > { %1500 = shalt.err (!%p1497_p12)
}
 0x41a   : > { %s1501_s24 = scalar_lea.hbm %s2025_s13, 256 }
 0x41b   : > { %p1502_p13 = scmp.ne.s32.totalorder %s2025_s13, %s1501_s24  ;;  %p1507_p1 = scmp.lt.u32.totalorder %s1501_s24, %s2025_s13 }
 0x41d   : > { %p1503_p6 = pnand %p1502_p13, %p1224_p9 }
 0x41f   : > { %p1504_p0 = pneg %p1503_p6 }
 0x421   : > { %p1509_p5 = pnand %p1507_p1, %p1504_p0 }
 0x423   : > { %1512 = shalt.err (!%p1509_p5)
}
 0x424   : > { %s1591_s25 = smov 128   ;;  %s1592_s27 = smov 8  }
 0x425   : > { %1183 = dma.vmem_to_hbm [thread:$0]  (%p1224_p9), %s949_s12, 256, %s2025_s13, [#allocation17], %s1591_s25, %s1591_s25, %s1592_s27  }
 0x426   : > { %s1593_s17 = smov [#allocation15]  }
 0x427   : > { %s935_s14 = sshll.u32 %s1593_s17, 4  ;;  %s936_s14 = int_to_ptr.vmem [resolvable:$true] %s935_s14 }
 0x428   : > { %s1513_s22 = scalar_lea.vmem %s936_s14, 256  ;;  %p1520_p3 = scmp.lt.s32.totalorder %s936_s14, %s936_s14 }
 0x429   : > { %p1514_p7 = scmp.ne.s32.totalorder %s936_s14, %s1513_s22  ;;  %p1521_p8 = scmp.lt.s32.totalorder %s1513_s22, %s1513_s22 }
 0x42b   : > { %p1515_p2 = pnand %p1514_p7, %p1224_p9  ;;  %p1522_p4 = por %p1521_p8, %p1520_p3 }
 0x42d   : > { %p1516_p10 = pneg %p1515_p2 }
 0x42f   : > { %p1523_p11 = pnand %p1522_p4, %p1516_p10 }
 0x482   : > { %v888_v27 = vpop.permute.xlu1 %887 }
 0x483   : > { %v893_v28 = vmul.f32 %v1284_v32, %v888_v27 }
 0x484   : > { %v890_v30 = vpop.permute.xlu0 %889 }
 0x485   : > { %v894_v49 = vmul.f32 %v1286_v38, %v890_v30 }
 0x486   : > { %v908_v33 = vpop.permute.xlu1 %907 }
 0x487   : > { %v913_v48 = vsel %vm903_vm14, %v893_v28, %v908_v33 }
 0x488   : > { %917 = vrot.lane.b32.xlu1 %v913_v48, %s1586_s30  ;;  %v910_v50 = vpop.permute.xlu0 %909 }
 0x489   : > { %v914_v51 = vsel %vm904_vm15, %v894_v49, %v910_v50 }
 0x48a   : > { %919 = vrot.lane.b32.xlu0 %v914_v51, %s1586_s30 }
 0x4fa   : > { %v918_v52 = vpop.permute.xlu1 %917 }
 0x4fb   : > { %923 = vst.msk [vmem:[#allocation15] sm:$0xff] %vm687_vm5, %v918_v52 }
 0x4fc   : > { %v920_v53 = vpop.permute.xlu0 %919 }
 0x4fd   : > { %924 = vst.msk [vmem:[#allocation15 + $0x8] sm:$0xff] %vm687_vm5, %v920_v53 }
 0x4fe   : > { %1526 = shalt.err (!%p1523_p11)
}
 0x4ff   : > { %s2059_s12 = sld [smem:[#allocation26_spill]] }
 0x505   : > { %s1527_s16 = scalar_lea.hbm %s2059_s12, 256 }
 0x506   : > { %p1528_p12 = scmp.ne.s32.totalorder %s2059_s12, %s1527_s16  ;;  %p1533_p0 = scmp.lt.u32.totalorder %s1527_s16, %s2059_s12 }
 0x508   : > { %p1529_p13 = pnand %p1528_p12, %p1224_p9 }
 0x50a   : > { %p1530_p6 = pneg %p1529_p13 }
 0x50c   : > { %p1535_p1 = pnand %p1533_p0, %p1530_p6 }
 0x50e   : > { %1538 = shalt.err (!%p1535_p1)
}
 0x50f   : > { %1181 = dma.vmem_to_hbm [thread:$0]  (%p1224_p9), %s936_s14, 256, %s2059_s12, [#allocation5], %s1591_s25, %s1591_s25, %s1592_s27  }
 0x510   : > { %1560 = dma.done.wait (%p1224_p9), [#allocation5], 256  }
 0x511   : > { %1562 = vsyncadd (%p1224_p9), [#allocation5], 4294967040 }
 0x512   : > { %1564 = dma.done.wait (%p1224_p9), [#allocation17], 256  }
 0x513   : > { %1566 = vsyncadd (%p1224_p9), [#allocation17], 4294967040 }
 0x514 PF: > { %s2060_s3 = sld [smem:[#allocation24_spill]] }
 0x51a   : > { %s30_s25 = sadd.s32 1, %s2060_s3  }
 0x51b   : > { %p27_p5 = scmp.ge.s32.totalorder %s30_s25, 6  }
 0x51d   :  { %29 = sbr.rel (!%p27_p5) target bundleno = 9 (0x9), region = 136 }
 0x524   :  { %968 = vsyncpa [#allocation4], 1 }
 0x525   :  { %970 = vsyncpa [#allocation4 + $0x1], 1 }
 0x526   :  { %971 = vsyncpa [#allocation7], 1 }
 0x527   :  { %972 = vsyncpa [#allocation10], 1 }
 0x528   :  { %973 = vsyncpa [#allocation13], 1 }
 0x529   :  { %974 = vsyncpa [#allocation5], 1 }
 0x52a   :  { %976 = vsyncpa [#allocation5 + $0x1], 1 }
 0x52b   :  { %977 = vsyncpa [#allocation17], 1 }

</bundles_post_ra>
